<compile_context>
chip_gen: v6e
topology: v6e:2x2x1
jax: 0.10.0
libtpu: 0.0.40
codegen_flags: <defaults>
</compile_context>

<pallas_src>
import math
import jax
import jax.numpy as jnp
from jax.experimental import pallas as pl
from jax.experimental.pallas import tpu as pltpu


_TR_CAP = 4096  # rows of 128 batch elems per tile -> 512K elems/tile,
                # ~12 MiB double-buffered (4 MiB in + 2 MiB out, x2).


def _round_up(n: int, m: int) -> int:
    return ((n + m - 1) // m) * m


def _cdiv(a: int, b: int) -> int:
    return -(-a // b)


def _tile_rows(rows: int):
    """Pick rows-per-tile (TR) and padded row count.

    TR is either the full row count (small inputs, single tile) or a multiple
    of 8 (sublane-dense) close to rows/n_tiles so padding stays minimal.
    """
    if rows <= _TR_CAP:
        return rows, rows
    n_tiles = _cdiv(rows, _TR_CAP)
    tr = _round_up(_cdiv(rows, n_tiles), 8)
    return tr, n_tiles * tr


def _mini_kernel(x_ref, wsel_ref, b_ref, o_ref):
    # x_ref   : VMEM (TR, 256) f32 -- 128 batch elems per row, features
    #           lane-interleaved: lane 2j = feature0, lane 2j+1 = feature1.
    # wsel_ref: VMEM (256, 128) f32 -- resident de-interleave+weight matrix,
    #           wsel[2j+f, j] = W[0, f].
    # b_ref   : SMEM (1,) f32 -- bias.
    # o_ref   : VMEM (TR, 128) f32 -- o[r, j] = sigmoid(w . x[128r+j] + b).
    s = jnp.dot(
        x_ref[...],
        wsel_ref[...],
        preferred_element_type=jnp.float32,
        precision=jax.lax.Precision.HIGHEST,
    )
    o_ref[...] = jax.nn.sigmoid(s + b_ref[0])


@jax.jit
def mini_forward(x, weight, bias):
    """x: (B, 2) float32, weight: (1, 2), bias: (1,) -> (B, 1) float32."""
    B = x.shape[0]
    rows = _cdiv(B, 128)
    tr, rows_pad = _tile_rows(rows)
    b_pad = rows_pad * 128

    xf = x.astype(jnp.float32)
    # Row-pad only (zeros); no-op when B is already aligned.  The reshape to
    # (rows_pad, 256) is a free row-major view -- no transpose HBM pass.
    x_pad = jnp.pad(xf, ((0, b_pad - B), (0, 0)))
    x_r = x_pad.reshape(rows_pad, 256)

    # Tiny constant "de-interleave + weight" matrix: wsel[2j+f, j] = W[0, f].
    w = weight.reshape(2).astype(jnp.float32)
    wsel = jnp.kron(jnp.eye(128, dtype=jnp.float32), w.reshape(2, 1))  # (256,128)
    b = bias.reshape(1).astype(jnp.float32)

    out = pl.pallas_call(
        _mini_kernel,
        out_shape=jax.ShapeDtypeStruct((rows_pad, 128), jnp.float32),
        grid=(rows_pad // tr,),
        in_specs=[
            pl.BlockSpec((tr, 256), lambda i: (i, 0)),
            pl.BlockSpec((256, 128), lambda i: (0, 0)),   # resident across steps
            pl.BlockSpec(memory_space=pltpu.MemorySpace.SMEM),
        ],
        out_specs=pl.BlockSpec((tr, 128), lambda i: (i, 0)),
        compiler_params=pltpu.CompilerParams(
            dimension_semantics=("parallel",),
            vmem_limit_bytes=32 * 1024 * 1024,
        ),
    )(x_r, wsel, b)

    # Back to the torch.nn.Linear output layout: (B, 1).
    return out.reshape(-1)[:B].reshape(B, 1)


def _init_params(key):
    # Deterministic kaiming_normal-style init for Linear(2 -> 1), matching the
    # shapes declared in Mini.__init__ (weight: (1, 2), bias: (1,)).
    kw, kb = jax.random.split(key)
    fan_in = 2
    std = math.sqrt(2.0 / fan_in)
    weight = std * jax.random.normal(kw, (1, 2), dtype=jnp.float32)
    bound = 1.0 / math.sqrt(fan_in)
    bias = jax.random.uniform(kb, (1,), dtype=jnp.float32,
                              minval=-bound, maxval=bound)
    return weight, bias


if __name__ == "__main__":
    key = jax.random.PRNGKey(0)
    kx, kx2, kp = jax.random.split(key, 3)

    weight, bias = _init_params(kp)

    # Small case (B=8): exercises padding up to one 128-element row.
    B = 8
    x = jax.random.normal(kx, (B, 2), dtype=jnp.float32)
    out = jax.block_until_ready(mini_forward(x, weight, bias))
    ref = jax.nn.sigmoid(x @ weight.T + bias)
    assert out.shape == (B, 1)
    assert jnp.allclose(out, ref, atol=2e-5), (out, ref)

    # Non-multiple-of-128 case to exercise the pad/slice path again.
    B2 = 200
    x2 = jax.random.normal(kx2, (B2, 2), dtype=jnp.float32)
    out2 = jax.block_until_ready(mini_forward(x2, weight, bias))
    ref2 = jax.nn.sigmoid(x2 @ weight.T + bias)
    assert out2.shape == (B2, 1)
    assert jnp.allclose(out2, ref2, atol=2e-5)

    print("KERNEL_OK")
</pallas_src>

<mosaic_0001>
module attributes {stable_mosaic.version = 11 : i64} {
  func.func @_mini_kernel(%arg0: i32, %arg1: memref<1x256xf32, #tpu.memory_space<vmem>>, %arg2: memref<256x128xf32, #tpu.memory_space<vmem>>, %arg3: memref<1xf32, #tpu.memory_space<smem>>, %arg4: memref<1x128xf32, #tpu.memory_space<vmem>>) attributes {dimension_semantics = [#tpu.dimension_semantics<parallel>], iteration_bounds = array<i64: 1>, scalar_prefetch = 0 : i64, scratch_operands = 0 : i64, tpu.core_type = #tpu.core_type<tc>, window_params = [{transform_indices = @transform_0, window_bounds = array<i64: 1, 256>}, {pipeline_mode = #tpu.pipeline_mode<synchronous>, transform_indices = @transform_1, window_bounds = array<i64: 256, 128>}, {transform_indices = @transform_2, window_bounds = array<i64: 1>}, {transform_indices = @transform_3, window_bounds = array<i64: 1, 128>}]} {
    %c0 = arith.constant 0 : index
    %c0_0 = arith.constant 0 : index
    %0 = vector.load %arg1[%c0, %c0_0] : memref<1x256xf32, #tpu.memory_space<vmem>>, vector<1x256xf32>
    %c0_1 = arith.constant 0 : index
    %c0_2 = arith.constant 0 : index
    %1 = vector.load %arg2[%c0_1, %c0_2] : memref<256x128xf32, #tpu.memory_space<vmem>>, vector<256x128xf32>
    %cst = arith.constant dense<0.000000e+00> : vector<1x128xf32>
    %2 = tpu.matmul %0, %1, %cst {dimension_numbers = #tpu.dot_dimension_numbers<[1], [0], [0], [1], [0, 0, 1, 1], [], []>, precision = #tpu.contract_precision<fp32>} : vector<1x256xf32>, vector<256x128xf32>, vector<1x128xf32> -> vector<1x128xf32>
    %c0_3 = arith.constant 0 : index
    %3 = memref.load %arg3[%c0_3] : memref<1xf32, #tpu.memory_space<smem>>
    %4 = vector.broadcast %3 : f32 to vector<1x128xf32>
    %5 = arith.addf %2, %4 : vector<1x128xf32>
    %6 = arith.negf %5 : vector<1x128xf32>
    %7 = math.exp %6 : vector<1x128xf32>
    %cst_4 = arith.constant 1.000000e+00 : f32
    %8 = vector.broadcast %cst_4 : f32 to vector<1x128xf32>
    %9 = arith.addf %8, %7 : vector<1x128xf32>
    %10 = arith.divf %8, %9 : vector<1x128xf32>
    %c0_5 = arith.constant 0 : index
    %c0_6 = arith.constant 0 : index
    %11 = vector.load %arg4[%c0_5, %c0_6] : memref<1x128xf32, #tpu.memory_space<vmem>>, vector<1x128xf32>
    tpu.vector_store %arg4[%c0_5, %c0_6], %10 {strides = array<i32>} : memref<1x128xf32, #tpu.memory_space<vmem>>, vector<1x128xf32>,
    return
  }
  func.func @transform_0(%arg0: i32) -> (i32, i32) {
    %c0_i32 = arith.constant 0 : i32
    %c0_i32_0 = arith.constant 0 : i32
    return %arg0, %c0_i32 : i32, i32
  }
  func.func @transform_1(%arg0: i32) -> (i32, i32) {
    %c0_i32 = arith.constant 0 : i32
    %c0_i32_0 = arith.constant 0 : i32
    %c0_i32_1 = arith.constant 0 : i32
    return %c0_i32, %c0_i32_0 : i32, i32
  }
  func.func @transform_2(%arg0: i32) -> i32 {
    %c0_i32 = arith.constant 0 : i32
    %c0_i32_0 = arith.constant 0 : i32
    return %c0_i32 : i32
  }
  func.func @transform_3(%arg0: i32) -> (i32, i32) {
    %c0_i32 = arith.constant 0 : i32
    %c0_i32_0 = arith.constant 0 : i32
    return %arg0, %c0_i32 : i32, i32
  }
}

</mosaic_0001>

<bundles_post_ra>
// kernel: mini_forward.1
= control target key start
LH: loop header
LB: loop body
LE: loop exit
PB: predicated region body
PF: predicated region fallthrough
CT: control target
= control target key end

     0   :  { %s1881_s1 = inlined_call_operand.vmem [shape: f32[256,128], index: 1, kind: input, shape index: {}]   ;;  %s1882_s0 = inlined_call_operand.vmem [shape: f32[1,256], index: 0, kind: input, shape index: {}]   ;;  %s1883_s2 = inlined_call_operand.<no memory space> [shape: f32[1], index: 2, kind: input, shape index: {}]   ;;  %s1884_s3 = inlined_call_operand.vmem [shape: f32[1,128], index: 3, kind: output, shape index: {}]  }
   0x1   :  { %v47_v0 = vld [vmem:[%s1881_s1 + $0xf8] sm:$0xff]  ;;  %v46_v2 = vld [vmem:[%s1881_s1 + $0xf0] sm:$0xff]  ;;  %v45_v7 = vld [vmem:[%s1881_s1 + $0xe8] sm:$0xff] }
   0x2   :  { %v31_v1 = vld [vmem:[%s1881_s1 + $0x78] sm:$0xff]  ;;  %v1178_v3 = vand.u32 4294901760, %v47_v0  ;;  %v1182_v5 = vand.u32 4294901760, %v46_v2  ;;  %v30_v6 = vld [vmem:[%s1881_s1 + $0x70] sm:$0xff]  ;;  %v29_v8 = vld [vmem:[%s1881_s1 + $0x68] sm:$0xff]  ;;  %v1195_v10 = vand.u32 4294901760, %v45_v7 }
   0x3   :  { %v1180_v4 = vand.u32 4294901760, %v31_v1  ;;  %v1193_v9 = vand.u32 4294901760, %v30_v6  ;;  %v1197_v11 = vand.u32 4294901760, %v29_v8  ;;  %v44_v12 = vld [vmem:[%s1881_s1 + $0xe0] sm:$0xff]  ;;  %v1208_v14 = vld [vmem:[%s1881_s1 + $0xd8] sm:$0xff]  ;;  %v1229_v21 = vld [vmem:[%s1881_s1 + $0xd0] sm:$0xff] }
   0x4   :  { %v28_v13 = vld [vmem:[%s1881_s1 + $0x60] sm:$0xff]  ;;  %935 = vmatprep.subr.mxu0 %v1178_v3  ;;  %v1211_v16 = vand.u32 4294901760, %v44_v12  ;;  %v1216_v18 = vand.u32 4294901760, %v1208_v14  ;;  %v1219_v19 = vsub.f32 %v47_v0, %v1178_v3  ;;  %v1224_v20 = vld [vmem:[%s1881_s1 + $0x58] sm:$0xff]  ;;  %v1234_v22 = vld [vmem:[%s1881_s1 + $0x50] sm:$0xff]  ;;  %v1244_v25 = vand.u32 4294901760, %v1229_v21 }
   0x5   :  { %v1213_v17 = vand.u32 4294901760, %v28_v13  ;;  %936 = vmatpush3.msra.mxu0 %v1180_v4  ;;  %v1238_v23 = vand.u32 4294901760, %v1224_v20  ;;  %v1241_v24 = vsub.f32 %v31_v1, %v1180_v4  ;;  %v1247_v26 = vsub.f32 %v46_v2, %v1182_v5  ;;  %v1252_v27 = vld [vmem:[%s1881_s1 + $0xc8] sm:$0xff]  ;;  %v1262_v29 = vld [vmem:[%s1881_s1 + $0xc0] sm:$0xff]  ;;  %v1314_v47 = vld [vmem:[%s1881_s1 + $0xb8] sm:$0xff] }
   0x6   :  { %v1257_v28 = vld [vmem:[%s1881_s1 + $0x48] sm:$0xff]  ;;  %937 = vmatprep.subr.mxu0 %v1182_v5  ;;  %v1898_v30 = vand.u32 4294901760, %v1219_v19  ;;  %v1267_v31 = vand.u32 4294901760, %v1234_v22  ;;  %v1270_v32 = vsub.f32 %v30_v6, %v1193_v9  ;;  %v1273_v33 = vand.u32 4294901760, %v1252_v27  ;;  %v1287_v38 = vld [vmem:[%s1881_s1 + $0x40] sm:$0xff]  ;;  %v1327_v52 = vld [vmem:[%s1881_s1 + $0x38] sm:$0xff] }
   0x7   :  { %938 = vmatpush3.msra.mxu0 %v1193_v9  ;;  %v1896_v34 = vand.u32 4294901760, %v1241_v24  ;;  %v1895_v35 = vand.u32 4294901760, %v1247_v26  ;;  %v1279_v36 = vsub.f32 %v45_v7, %v1195_v10  ;;  %v1282_v37 = vand.u32 4294901760, %v1257_v28  ;;  %v1337_v57 = vld [vmem:[%s1881_s1 + $0xb0] sm:$0xff]  ;;  %v1368_v6 = vld [vmem:[%s1881_s1 + $0xa8] sm:$0xff] }
   0x8   :  { %939 = vmatprep.subr.mxu0 %v1195_v10  ;;  %v289_v39 = vsub.f32 %v1219_v19, %v1898_v30  ;;  %v1893_v40 = vand.u32 4294901760, %v1270_v32  ;;  %v1295_v41 = vsub.f32 %v29_v8, %v1197_v11  ;;  %v1298_v42 = vand.u32 4294901760, %v1262_v29  ;;  %v1352_v62 = vld [vmem:[%s1881_s1 + $0x30] sm:$0xff]  ;;  %v1504_v30 = vld [vmem:[%s1881_s1 + $0x88] sm:$0xff] }
   0x9   :  { %940 = vmatpush3.msra.mxu0 %v1197_v11  ;;  %v177_v43 = vsub.f32 %v1241_v24, %v1896_v34  ;;  %v296_v44 = vsub.f32 %v1247_v26, %v1895_v35  ;;  %v1891_v45 = vand.u32 4294901760, %v1279_v36  ;;  %v1309_v46 = vsub.f32 %v44_v12, %v1211_v16 }
   0xa   :  { %1959 = vst [vmem:[#allocation3_spill] sm:$0xff] %v1298_v42  ;;  %941 = vmatprep.subr.mxu0 %v1211_v16  ;;  %v290_v48 = vand.u32 4294901760, %v289_v39  ;;  %v184_v49 = vsub.f32 %v1270_v32, %v1893_v40  ;;  %v1890_v50 = vand.u32 4294901760, %v1295_v41  ;;  %v1322_v51 = vand.u32 4294901760, %v1287_v38  ;;  %v1477_v40 = vld [vmem:[%s1881_s1 + $0x90] sm:$0xff] }
   0xb   :  { %942 = vmatpush3.msra.mxu0 %v1213_v17  ;;  %v178_v53 = vand.u32 4294901760, %v177_v43  ;;  %v297_v54 = vand.u32 4294901760, %v296_v44  ;;  %v303_v55 = vsub.f32 %v1279_v36, %v1891_v45  ;;  %v1888_v56 = vand.u32 4294901760, %v1309_v46  ;;  %v1461_v45 = vld [vmem:[%s1881_s1 + $0x18] sm:$0xff] }
   0xc   :  { %1960 = vst [vmem:[#allocation4_spill] sm:$0xff] %v1322_v51  ;;  %943 = vmatprep.subr.mxu0 %v1216_v18  ;;  %970 = vmatprep.subr.mxu1 %v290_v48  ;;  %v185_v58 = vand.u32 4294901760, %v184_v49  ;;  %v191_v59 = vsub.f32 %v1295_v41, %v1890_v50  ;;  %v1344_v60 = vsub.f32 %v28_v13, %v1213_v17  ;;  %v1347_v61 = vand.u32 4294901760, %v1314_v47 }
   0xd   :  { %944 = vmatpush3.msra.mxu0 %v1238_v23  ;;  %971 = vmatpush3.msra.mxu1 %v178_v53  ;;  %v304_v63 = vand.u32 4294901760, %v303_v55  ;;  %v310_v0 = vsub.f32 %v1309_v46, %v1888_v56  ;;  %v1360_v1 = vsub.f32 %v1208_v14, %v1216_v18  ;;  %v1363_v2 = vand.u32 4294901760, %v1327_v52  ;;  %v1382_v14 = vld [vmem:[%s1881_s1 + $0x28] sm:$0xff] }
   0xe   :  { %1961 = vst [vmem:[#allocation5_spill] sm:$0xff] %v1347_v61  ;;  %945 = vmatprep.subr.mxu0 %v1244_v25  ;;  %972 = vmatprep.subr.mxu1 %v297_v54  ;;  %v192_v7 = vand.u32 4294901760, %v191_v59  ;;  %v1886_v8 = vand.u32 4294901760, %v1344_v60  ;;  %v1374_v12 = vsub.f32 %v1224_v20, %v1238_v23  ;;  %v1377_v13 = vand.u32 4294901760, %v1337_v57 }
   0xf   :  { %1962 = vst [vmem:[#allocation6_spill] sm:$0xff] %v1363_v2  ;;  %946 = vmatpush3.msra.mxu0 %v1267_v31  ;;  %973 = vmatpush3.msra.mxu1 %v185_v58  ;;  %v311_v39 = vand.u32 4294901760, %v310_v0  ;;  %v1885_v43 = vand.u32 4294901760, %v1360_v1  ;;  %v1388_v44 = vsub.f32 %v1229_v21, %v1244_v25  ;;  %v1391_v20 = vand.u32 4294901760, %v1352_v62  ;;  %v1408_v21 = vld [vmem:[%s1881_s1 + $0xa0] sm:$0xff] }
  0x10   :  { %1963 = vst [vmem:[#allocation7_spill] sm:$0xff] %v1377_v13  ;;  %947 = vmatprep.subr.mxu0 %v1273_v33  ;;  %974 = vmatprep.subr.mxu1 %v304_v63  ;;  %v198_v48 = vsub.f32 %v1344_v60, %v1886_v8  ;;  %v1887_v49 = vand.u32 4294901760, %v1374_v12  ;;  %v1400_v53 = vsub.f32 %v1234_v22, %v1267_v31  ;;  %v1403_v54 = vand.u32 4294901760, %v1368_v6 }
  0x11   :  { %1964 = vst [vmem:[#allocation8_spill] sm:$0xff] %v1391_v20  ;;  %948 = vmatpush3.msra.mxu0 %v1282_v37  ;;  %975 = vmatpush3.msra.mxu1 %v192_v7  ;;  %v317_v55 = vsub.f32 %v1360_v1, %v1885_v43  ;;  %v1889_v58 = vand.u32 4294901760, %v1388_v44  ;;  %v1417_v22 = vsub.f32 %v1252_v27, %v1273_v33  ;;  %v1420_v59 = vand.u32 4294901760, %v1382_v14  ;;  %v1434_v27 = vld [vmem:[%s1881_s1 + $0x20] sm:$0xff] }
  0x12   :  { %1965 = vst [vmem:[#allocation9_spill] sm:$0xff] %v1403_v54  ;;  %949 = vmatprep.subr.mxu0 %v1298_v42  ;;  %976 = vmatprep.subr.mxu1 %v311_v39  ;;  %v199_v63 = vand.u32 4294901760, %v198_v48  ;;  %v205_v0 = vsub.f32 %v1374_v12, %v1887_v49  ;;  %v1892_v7 = vand.u32 4294901760, %v1400_v53  ;;  %v1429_v43 = vsub.f32 %v1257_v28, %v1282_v37  ;;  %v1447_v28 = vld [vmem:[%s1881_s1 + $0x98] sm:$0xff] }
  0x13   :  { %1966 = vst [vmem:[#allocation10_spill] sm:$0xff] %v1420_v59  ;;  %950 = vmatpush3.msra.mxu0 %v1322_v51  ;;  %v318_v8 = vand.u32 4294901760, %v317_v55  ;;  %v324_v39 = vsub.f32 %v1388_v44, %v1889_v58  ;;  %v1894_v48 = vand.u32 4294901760, %v1417_v22  ;;  %v1442_v49 = vand.u32 4294901760, %v1408_v21 }
  0x14   :  { %977 = vmatpush3.msra.mxu1 %v199_v63  ;;  %951 = vmatprep.subr.mxu0 %v1347_v61  ;;  %v206_v56 = vand.u32 4294901760, %v205_v0  ;;  %v212_v55 = vsub.f32 %v1400_v53, %v1892_v7  ;;  %v1897_v58 = vand.u32 4294901760, %v1429_v43  ;;  %v1456_v50 = vsub.f32 %v1262_v29, %v1298_v42 }
  0x15   :  { %1967 = vst [vmem:[#allocation11_spill] sm:$0xff] %v1442_v49  ;;  %978 = vmatprep.subr.mxu1 %v318_v8  ;;  %952 = vmatpush3.msra.mxu0 %v1363_v2  ;;  %v325_v63 = vand.u32 4294901760, %v324_v39  ;;  %v331_v0 = vsub.f32 %v1417_v22, %v1894_v48  ;;  %v1468_v7 = vand.u32 4294901760, %v1434_v27  ;;  %v1472_v29 = vsub.f32 %v1287_v38, %v1322_v51  ;;  %v1490_v38 = vld [vmem:[%s1881_s1 + $0x10] sm:$0xff] }
  0x16   :  { %979 = vmatpush3.msra.mxu1 %v206_v56  ;;  %953 = vmatprep.subr.mxu0 %v1377_v13  ;;  %v213_v8 = vand.u32 4294901760, %v212_v55  ;;  %v219_v39 = vsub.f32 %v1429_v43, %v1897_v58  ;;  %v1901_v48 = vand.u32 4294901760, %v1456_v50  ;;  %v1485_v35 = vand.u32 4294901760, %v1447_v28 }
  0x17   :  { %1968 = vst [vmem:[#allocation12_spill] sm:$0xff] %v1468_v7  ;;  %980 = vmatprep.subr.mxu1 %v325_v63  ;;  %954 = vmatpush3.msra.mxu0 %v1391_v20  ;;  %v332_v56 = vand.u32 4294901760, %v331_v0  ;;  %v1902_v55 = vand.u32 4294901760, %v1472_v29  ;;  %v1496_v34 = vsub.f32 %v1314_v47, %v1347_v61  ;;  %v1499_v58 = vand.u32 4294901760, %v1461_v45 }
  0x18   :  { %1969 = vst [vmem:[#allocation13_spill] sm:$0xff] %v1485_v35  ;;  %981 = vmatpush3.msra.mxu1 %v213_v8  ;;  %955 = vmatprep.subr.mxu0 %v1403_v54  ;;  %v220_v63 = vand.u32 4294901760, %v219_v39  ;;  %v338_v0 = vsub.f32 %v1456_v50, %v1901_v48  ;;  %v1512_v47 = vsub.f32 %v1327_v52, %v1363_v2  ;;  %v1515_v15 = vand.u32 4294901760, %v1477_v40  ;;  %v1532_v52 = vld [vmem:[%s1881_s1 + $0x8] sm:$0xff] }
  0x19   :  { %1970 = vst [vmem:[#allocation14_spill] sm:$0xff] %v1499_v58  ;;  %982 = vmatprep.subr.mxu1 %v332_v56  ;;  %956 = vmatpush3.msra.mxu0 %v1420_v59  ;;  %v226_v8 = vsub.f32 %v1472_v29, %v1902_v55  ;;  %v1524_v61 = vsub.f32 %v1337_v57, %v1377_v13  ;;  %v1527_v48 = vand.u32 4294901760, %v1490_v38  ;;  %v1541_v57 = vand.u32 4294901760, %v1504_v30  ;;  %v1546_v13 = vld [vmem:[%s1881_s1 + $0x80] sm:$0xff] }
  0x1a   :  { %1971 = vst [vmem:[#allocation15_spill] sm:$0xff] %v1512_v47  ;;  %1972 = vst [vmem:[#allocation16_spill] sm:$0xff] %v1515_v15  ;;  %983 = vmatpush3.msra.mxu1 %v220_v63  ;;  %957 = vmatprep.subr.mxu0 %v1442_v49  ;;  %v339_v56 = vand.u32 4294901760, %v338_v0  ;;  %v1538_v39 = vsub.f32 %v1352_v62, %v1391_v20  ;;  %v1977_v2 = vand.u32 4294901760, %v1496_v34  ;;  %v1979_v20 = vand.u32 4294901760, %v1512_v47 }
  0x1b   :  { %1973 = vst [vmem:[#allocation17_spill] sm:$0xff] %v1524_v61  ;;  %1974 = vst [vmem:[#allocation18_spill] sm:$0xff] %v1527_v48  ;;  %958 = vmatpush3.msra.mxu0 %v1468_v7  ;;  %v227_v63 = vand.u32 4294901760, %v226_v8  ;;  %v1919_v55 = vand.u32 4294901760, %v1524_v61  ;;  %v1555_v62 = vsub.f32 %v1368_v6, %v1403_v54  ;;  %v1563_v8 = vand.u32 4294901760, %v1532_v52  ;;  %v1572_v6 = vld [vmem:[%s1881_s1] sm:$0xff] }
  0x1c   :  { %1975 = vst [vmem:[#allocation19_spill] sm:$0xff] %v1538_v39  ;;  %1976 = vst [vmem:[#allocation20_spill] sm:$0xff] %v1541_v57  ;;  %v345_v0 = vsub.f32 %v1496_v34, %v1977_v2  ;;  %984 = vmatprep.subr.mxu1 %v339_v56  ;;  %959 = vmatprep.subr.mxu0 %v1485_v35  ;;  %v233_v51 = vsub.f32 %v1512_v47, %v1979_v20  ;;  %v1580_v54 = vand.u32 4294901760, %v1546_v13 }
  0x1d   :  { %1978 = vst [vmem:[#allocation21_spill] sm:$0xff] %v1555_v62  ;;  %1980 = vst [vmem:[#allocation22_spill] sm:$0xff] %v1563_v8  ;;  %v1567_v2 = vsub.f32 %v1382_v14, %v1420_v59  ;;  %985 = vmatpush3.msra.mxu1 %v227_v63  ;;  %960 = vmatpush3.msra.mxu0 %v1499_v58  ;;  %v352_v20 = vsub.f32 %v1524_v61, %v1919_v55  ;;  %v1926_v42 = vand.u32 4294901760, %v1555_v62 }
  0x1e   :  { %v346_v56 = vand.u32 4294901760, %v345_v0  ;;  %1981 = vst [vmem:[#allocation23_spill] sm:$0xff] %v1580_v54  ;;  %v234_v14 = vand.u32 4294901760, %v233_v51  ;;  %961 = vmatprep.subr.mxu0 %v1515_v15  ;;  %v1982_v59 = vand.u32 4294901760, %v1538_v39  ;;  %v1589_v0 = vsub.f32 %v1408_v21, %v1442_v49 }
  0x1f   :  { %v353_v55 = vand.u32 4294901760, %v352_v20  ;;  %962 = vmatpush3.msra.mxu0 %v1527_v48  ;;  %v359_v51 = vsub.f32 %v1555_v62, %v1926_v42  ;;  %v1596_v61 = vand.u32 4294901760, %v1572_v6  ;;  %v1984_v21 = vand.u32 4294901760, %v1567_v2 }
  0x20   :  { %v240_v47 = vsub.f32 %v1538_v39, %v1982_v59  ;;  %986 = vmatprep.subr.mxu1 %v346_v56  ;;  %v1600_v59 = vsub.f32 %v1434_v27, %v1468_v7  ;;  %963 = vmatprep.subr.mxu0 %v1541_v57  ;;  %v1931_v20 = vand.u32 4294901760, %v1589_v0  ;;  %v1985_v49 = vlaneseq  ;;  %v15_v27 = vld [vmem:[%s1882_s0] sm:$0x3] }
  0x21   :  { %1983 = vst [vmem:[#allocation24_spill] sm:$0xff] %v1596_v61  ;;  %987 = vmatpush3.msra.mxu1 %v234_v14  ;;  %v247_v56 = vsub.f32 %v1567_v2, %v1984_v21  ;;  %v360_v42 = vand.u32 4294901760, %v359_v51  ;;  %964 = vmatpush3.msra.mxu0 %v1563_v8  ;;  %v1619_v14 = vsub.f32 %v1461_v45, %v1499_v58 }
  0x22   :  { %v241_v63 = vand.u32 4294901760, %v240_v47  ;;  %v52_v39 = vshrl.u32 %v1985_v49, 7  ;;  %988 = vmatprep.subr.mxu1 %v353_v55  ;;  %v1934_v62 = vand.u32 4294901760, %v1600_v59  ;;  %v1615_v47 = vsub.f32 %v1447_v28, %v1485_v35  ;;  %965 = vmatprep.subr.mxu0 %v1580_v54 }
  0x23   :  { %v248_v49 = vand.u32 4294901760, %v247_v56  ;;  %v366_v55 = vsub.f32 %v1589_v0, %v1931_v20  ;;  %966 = vmatpush3.msra.mxu0 %v1596_v61  ;;  %v1633_v56 = vsub.f32 %v1477_v40, %v1515_v15 }
  0x24   :  { %989 = vmatpush3.msra.mxu1 %v241_v63  ;;  %v53_v51 = vsub.s32 0, %v52_v39  ;;  %v57_v21 = vsub.s32 1, %v52_v39  ;;  %v254_v28 = vsub.f32 %v1600_v59, %v1934_v62  ;;  %v1936_v45 = vand.u32 4294901760, %v1615_v47  ;;  %1005 = vmatprep.subr.mxu0 %v1219_v19 }
  0x25   :  { %990 = vmatprep.subr.mxu1 %v360_v42  ;;  %v1935_v63 = vand.u32 4294901760, %v1619_v14  ;;  %v367_v58 = vand.u32 4294901760, %v366_v55  ;;  %v1638_v42 = vsub.f32 %v1490_v38, %v1527_v48  ;;  %v1654_v38 = vsub.f32 %v1504_v30, %v1541_v57 }
  0x26   :  { %991 = vmatpush3.msra.mxu1 %v248_v49  ;;  %v54_v20 = vrot.slane %v15_v27, %v53_v51  ;;  %v58_v35 = vrot.slane %v15_v27, %v57_v21  ;;  %v255_v39 = vand.u32 4294901760, %v254_v28  ;;  %v373_v62 = vsub.f32 %v1615_v47, %v1936_v45 }
  0x27   :  { %v261_v40 = vsub.f32 %v1619_v14, %v1935_v63  ;;  %v1937_v49 = vand.u32 4294901760, %v1633_v56  ;;  %992 = vmatprep.subr.mxu1 %v367_v58  ;;  %v1661_v58 = vsub.f32 %v1532_v52, %v1563_v8  ;;  %v1988_v30 = vand.u32 4294901760, %v1638_v42 }
  0x28   :  { %v1647_v55 = vand.u32 4294901760, %v58_v35  ;;  %v1649_v27 = vand.u32 4294901760, %v54_v20  ;;  %993 = vmatpush3.msra.mxu1 %v255_v39  ;;  %v374_v21 = vand.u32 4294901760, %v373_v62  ;;  %v1677_v52 = vsub.f32 %v1546_v13, %v1580_v54 }
  0x29   :  { %v262_v28 = vand.u32 4294901760, %v261_v40  ;;  %v380_v63 = vsub.f32 %v1633_v56, %v1937_v49  ;;  %v268_v39 = vsub.f32 %v1638_v42, %v1988_v30  ;;  %v1942_v49 = vand.u32 4294901760, %v1661_v58 }
  0x2a   :  { %1986 = vst [vmem:[#allocation25_spill] sm:$0xff] %v1647_v55  ;;  %1987 = vst [vmem:[#allocation26_spill] sm:$0xff] %v1649_v27  ;;  %v1664_v45 = vsub.f32 %v58_v35, %v1647_v55  ;;  %v1667_v51 = vsub.f32 %v54_v20, %v1649_v27  ;;  %398 = vmatprep.mubr.f32.mxu1 %v1647_v55  ;;  %994 = vmatprep.subr.mxu1 %v374_v21  ;;  %v1990_v55 = vand.u32 4294901760, %v1654_v38 }
  0x2b   :  { %v381_v40 = vand.u32 4294901760, %v380_v63  ;;  %v1681_v35 = vsub.f32 %v1572_v6, %v1596_v61  ;;  %995 = vmatpush3.msra.mxu1 %v262_v28  ;;  %v269_v62 = vand.u32 4294901760, %v268_v39  ;;  %v275_v13 = vsub.f32 %v1661_v58, %v1942_v49 }
  0x2c   :  { %v1947_v20 = vand.u32 4294901760, %v1664_v45  ;;  %v1952_v30 = vand.u32 4294901760, %v1667_v51  ;;  %v387_v63 = vsub.f32 %v1654_v38, %v1990_v55  ;;  %v1951_v21 = vand.u32 4294901760, %v1677_v52 }
  0x2d   :  { %1989 = vst [vmem:[#allocation27_spill] sm:$0xff] %v1681_v35  ;;  %996 = vmatprep.subr.mxu1 %v381_v40  ;;  %v1950_v6 = vand.u32 4294901760, %v1681_v35  ;;  %v276_v55 = vand.u32 4294901760, %v275_v13  ;;  %v1999_v13 = vld [vmem:[#allocation7_spill] sm:$0xff] }
  0x2e   :  { %v160_v61 = vsub.f32 %v1664_v45, %v1947_v20  ;;  %v166_v28 = vsub.f32 %v1667_v51, %v1952_v30  ;;  %997 = vmatpush3.msra.mxu1 %v269_v62  ;;  %v388_v39 = vand.u32 4294901760, %v387_v63  ;;  %v394_v40 = vsub.f32 %v1677_v52, %v1951_v21  ;;  %v1996_v62 = vld [vmem:[#allocation5_spill] sm:$0xff]  ;;  %v1998_v63 = vld [vmem:[#allocation6_spill] sm:$0xff] }
  0x2f   :  { %v282_v49 = vsub.f32 %v1681_v35, %v1950_v6  ;;  %v2004_v6 = vld [vmem:[#allocation13_spill] sm:$0xff]  ;;  %v2005_v21 = vld [vmem:[#allocation14_spill] sm:$0xff]  ;;  %v2006_v30 = vand.u32 4294901760, %v1219_v19  ;;  %v2014_v19 = vld [vmem:[#allocation24_spill] sm:$0xff] }
  0x30   :  { %v161_v54 = vand.u32 4294901760, %v160_v61  ;;  %v167_v8 = vand.u32 4294901760, %v166_v28  ;;  %998 = vmatprep.subr.mxu1 %v388_v39  ;;  %v395_v20 = vand.u32 4294901760, %v394_v40  ;;  %v1991_v61 = vld [vmem:[#allocation15_spill] sm:$0xff]  ;;  %v2000_v28 = vld [vmem:[#allocation8_spill] sm:$0xff]  ;;  %v2001_v39 = vld [vmem:[#allocation9_spill] sm:$0xff] }
  0x31   :  { %999 = vmatpush3.msra.mxu1 %v276_v55  ;;  %v283_v57 = vand.u32 4294901760, %v282_v49  ;;  %v1995_v49 = vld [vmem:[#allocation19_spill] sm:$0xff]  ;;  %v2002_v55 = vld [vmem:[#allocation10_spill] sm:$0xff] }
  0x32   :  { %162 = vmatprep.mubr.f32.mxu0 %v161_v54  ;;  %1000 = vmatprep.subr.mxu1 %v395_v20  ;;  %v1992_v54 = vld [vmem:[#allocation3_spill] sm:$0xff]  ;;  %v1997_v20 = vld [vmem:[#allocation21_spill] sm:$0xff] }
  0x33   :  { %168 = vmatmul.mubr.f32.vlgmr.msra.gmra.mxu0 %v167_v8  ;;  %1001 = vmatpush3.msra.mxu1 %v283_v57  ;;  %v1993_v57 = vld [vmem:[#allocation17_spill] sm:$0xff]  ;;  %v1994_v8 = vld [vmem:[#allocation4_spill] sm:$0xff]  ;;  %v2003_v40 = vld [vmem:[#allocation11_spill] sm:$0xff] }
  0x34   :  { %1006 = vmatpush3.msra.mxu0 %v1241_v24  ;;  %400 = vmatmul.mubr.f32.vlgmr.msra.gmra.mxu1 %v1649_v27  ;;  %v2007_v27 = vand.u32 4294901760, %v1241_v24  ;;  %v2015_v24 = vand.u32 4294901760, %v1295_v41 }
  0x35   :  { %1007 = vmatprep.subr.mxu0 %v1247_v26  ;;  %1040 = vmatprep.subr.mxu1 %v1178_v3 }
  0x36   :  { %1008 = vmatpush3.msra.mxu0 %v1270_v32  ;;  %1041 = vmatpush3.msra.mxu1 %v1180_v4 }
  0x37   :  { %1009 = vmatprep.subr.mxu0 %v1279_v36  ;;  %1042 = vmatprep.subr.mxu1 %v1182_v5 }
  0x38   :  { %1010 = vmatpush3.msra.mxu0 %v1295_v41  ;;  %1043 = vmatpush3.msra.mxu1 %v1193_v9  ;;  %v2022_v41 = vand.u32 4294901760, %v1388_v44 }
  0x39   :  { %1011 = vmatprep.subr.mxu0 %v1309_v46  ;;  %1044 = vmatprep.subr.mxu1 %v1195_v10 }
  0x3a   :  { %1012 = vmatpush3.msra.mxu0 %v1344_v60  ;;  %1045 = vmatpush3.msra.mxu1 %v1197_v11 }
  0x3b   :  { %1013 = vmatprep.subr.mxu0 %v1360_v1  ;;  %1046 = vmatprep.subr.mxu1 %v1211_v16 }
  0x3c   :  { %1014 = vmatpush3.msra.mxu0 %v1374_v12  ;;  %1047 = vmatpush3.msra.mxu1 %v1213_v17 }
  0x3d   :  { %1015 = vmatprep.subr.mxu0 %v1388_v44  ;;  %1048 = vmatprep.subr.mxu1 %v1216_v18  ;;  %v2044_v44 = vld [vmem:[#allocation27_spill] sm:$0xff] }
  0x3e   :  { %1016 = vmatpush3.msra.mxu0 %v1400_v53  ;;  %1049 = vmatpush3.msra.mxu1 %v1238_v23 }
  0x3f   :  { %1017 = vmatprep.subr.mxu0 %v1417_v22  ;;  %1050 = vmatprep.subr.mxu1 %v1244_v25 }
  0x40   :  { %1018 = vmatpush3.msra.mxu0 %v1429_v43  ;;  %1051 = vmatpush3.msra.mxu1 %v1267_v31 }
  0x41   :  { %1019 = vmatprep.subr.mxu0 %v1456_v50  ;;  %1052 = vmatprep.subr.mxu1 %v1273_v33 }
  0x42   :  { %1020 = vmatpush3.msra.mxu0 %v1472_v29  ;;  %1053 = vmatpush3.msra.mxu1 %v1282_v37 }
  0x43   :  { %1021 = vmatprep.subr.mxu0 %v1496_v34  ;;  %1054 = vmatprep.subr.mxu1 %v1992_v54 }
  0x44   :  { %1022 = vmatpush3.msra.mxu0 %v1991_v61  ;;  %1055 = vmatpush3.msra.mxu1 %v1994_v8 }
  0x45   :  { %1023 = vmatprep.subr.mxu0 %v1993_v57  ;;  %1056 = vmatprep.subr.mxu1 %v1996_v62 }
  0x46   :  { %1024 = vmatpush3.msra.mxu0 %v1995_v49  ;;  %1057 = vmatpush3.msra.mxu1 %v1998_v63 }
  0x47   :  { %1025 = vmatprep.subr.mxu0 %v1997_v20  ;;  %1058 = vmatprep.subr.mxu1 %v1999_v13 }
  0x48   :  { %1026 = vmatpush3.msra.mxu0 %v1567_v2  ;;  %1059 = vmatpush3.msra.mxu1 %v2000_v28 }
  0x49   :  { %1027 = vmatprep.subr.mxu0 %v1589_v0  ;;  %1060 = vmatprep.subr.mxu1 %v2001_v39 }
  0x4a   :  { %1028 = vmatpush3.msra.mxu0 %v1600_v59  ;;  %1061 = vmatpush3.msra.mxu1 %v2002_v55 }
  0x4b   :  { %1029 = vmatprep.subr.mxu0 %v1615_v47  ;;  %1062 = vmatprep.subr.mxu1 %v2003_v40 }
  0x4c   :  { %1030 = vmatpush3.msra.mxu0 %v1619_v14  ;;  %535 = vmatprep.mubr.f32.mxu0 %v1664_v45 }
  0x4d   :  { %1031 = vmatprep.subr.mxu0 %v1633_v56  ;;  %1063 = vmatpush3.msra.mxu1 %v1468_v7  ;;  %v2010_v7 = vld [vmem:[#allocation22_spill] sm:$0xff] }
  0x4e   :  { %1032 = vmatpush3.msra.mxu0 %v1638_v42  ;;  %1064 = vmatprep.subr.mxu1 %v2004_v6  ;;  %v2008_v6 = vld [vmem:[#allocation20_spill] sm:$0xff] }
  0x4f   :  { %1033 = vmatprep.subr.mxu0 %v1654_v38  ;;  %1065 = vmatpush3.msra.mxu1 %v2005_v21  ;;  %v2009_v21 = vand.u32 4294901760, %v1247_v26  ;;  %v2017_v26 = vand.u32 4294901760, %v1309_v46  ;;  %v2023_v46 = vand.u32 4294901760, %v1400_v53  ;;  %v2045_v53 = vand.u32 4294901760, %v2044_v44 }
  0x50   :  { %1034 = vmatpush3.msra.mxu0 %v1661_v58  ;;  %1066 = vmatprep.subr.mxu1 %v1515_v15  ;;  %v2011_v15 = vand.u32 4294901760, %v1270_v32  ;;  %v2020_v32 = vand.u32 4294901760, %v1360_v1  ;;  %v2041_v1 = vand.u32 4294901760, %v1661_v58 }
  0x51   :  { %1035 = vmatprep.subr.mxu0 %v1677_v52  ;;  %1067 = vmatpush3.msra.mxu1 %v1527_v48  ;;  %v2013_v48 = vand.u32 4294901760, %v1279_v36  ;;  %v2021_v36 = vand.u32 4294901760, %v1374_v12  ;;  %v2042_v12 = vand.u32 4294901760, %v1677_v52 }
  0x52   :  { %1036 = vmatpush3.msra.mxu0 %v1681_v35  ;;  %1068 = vmatprep.subr.mxu1 %v2008_v6  ;;  %v2012_v35 = vld [vmem:[#allocation23_spill] sm:$0xff] }
  0x53   :  { %538 = vmatmul.mubr.f32.vlgmr.msra.gmra.mxu0 %v1667_v51  ;;  %1075 = vmatprep.subr.mxu0 %v2006_v30  ;;  %v2018_v30 = vand.u32 4294901760, %v1667_v51 }
  0x54   :  { %1076 = vmatpush3.msra.mxu0 %v2007_v27  ;;  %1069 = vmatpush3.msra.mxu1 %v2010_v7  ;;  %v2016_v27 = vand.u32 4294901760, %v1664_v45 }
  0x55   :  { %1077 = vmatprep.subr.mxu0 %v2009_v21  ;;  %1070 = vmatprep.subr.mxu1 %v2012_v35 }
  0x56   :  { %1078 = vmatpush3.msra.mxu0 %v2011_v15  ;;  %1071 = vmatpush3.msra.mxu1 %v2014_v19  ;;  %v2019_v15 = vand.u32 4294901760, %v1344_v60  ;;  %v2040_v60 = vand.u32 4294901760, %v1654_v38  ;;  %v49_v38 = vstv %s1883_s2 }
  0x57   :  { %1079 = vmatprep.subr.mxu0 %v2013_v48  ;;  %642 = vmatprep.mubr.f32.mxu1 %v2016_v27  ;;  %v2047_v48 = vld [vmem:[#allocation26_spill] sm:$0xff] }
  0x58   :  { %1080 = vmatpush3.msra.mxu0 %v2015_v24  ;;  %646 = vmatmul.mubr.f32.vlgmr.msra.gmra.mxu1 %v2018_v30 }
  0x59   :  { %1081 = vmatprep.subr.mxu0 %v2017_v26  ;;  %1110 = vmatprep.subr.mxu1 %v1178_v3  ;;  %v2024_v3 = vand.u32 4294901760, %v1417_v22  ;;  %v2046_v22 = vld [vmem:[#allocation12_spill] sm:$0xff] }
  0x5a   :  { %1082 = vmatpush3.msra.mxu0 %v2019_v15  ;;  %1111 = vmatpush3.msra.mxu1 %v1180_v4  ;;  %v2025_v4 = vand.u32 4294901760, %v1429_v43  ;;  %v2043_v43 = vld [vmem:[#allocation25_spill] sm:$0xff] }
  0x5b   :  { %1083 = vmatprep.subr.mxu0 %v2020_v32  ;;  %1112 = vmatprep.subr.mxu1 %v1182_v5  ;;  %v2026_v5 = vand.u32 4294901760, %v1456_v50  ;;  %v2039_v50 = vand.u32 4294901760, %v1638_v42 }
  0x5c   :  { %1084 = vmatpush3.msra.mxu0 %v2021_v36  ;;  %1113 = vmatpush3.msra.mxu1 %v1193_v9  ;;  %v2027_v9 = vand.u32 4294901760, %v1472_v29  ;;  %v2048_v29 = vld [vmem:[#allocation13_spill] sm:$0xff] }
  0x5d   :  { %1085 = vmatprep.subr.mxu0 %v2022_v41  ;;  %1114 = vmatprep.subr.mxu1 %v1195_v10  ;;  %v2028_v10 = vand.u32 4294901760, %v1496_v34  ;;  %v2037_v34 = vand.u32 4294901760, %v1619_v14 }
  0x5e   :  { %1086 = vmatpush3.msra.mxu0 %v2023_v46  ;;  %1115 = vmatpush3.msra.mxu1 %v1197_v11  ;;  %v2029_v11 = vand.u32 4294901760, %v1991_v61 }
  0x5f   :  { %1087 = vmatprep.subr.mxu0 %v2024_v3  ;;  %1116 = vmatprep.subr.mxu1 %v1211_v16  ;;  %v2030_v16 = vand.u32 4294901760, %v1993_v57 }
  0x60   :  { %1088 = vmatpush3.msra.mxu0 %v2025_v4  ;;  %1117 = vmatpush3.msra.mxu1 %v1213_v17  ;;  %v2031_v17 = vand.u32 4294901760, %v1995_v49 }
  0x61   :  { %1089 = vmatprep.subr.mxu0 %v2026_v5  ;;  %1118 = vmatprep.subr.mxu1 %v1216_v18  ;;  %v2032_v18 = vand.u32 4294901760, %v1997_v20 }
  0x62   :  { %1090 = vmatpush3.msra.mxu0 %v2027_v9  ;;  %1119 = vmatpush3.msra.mxu1 %v1238_v23  ;;  %v2033_v23 = vand.u32 4294901760, %v1567_v2  ;;  %v2049_v2 = vld [vmem:[#allocation14_spill] sm:$0xff] }
  0x63   :  { %1091 = vmatprep.subr.mxu0 %v2028_v10  ;;  %1120 = vmatprep.subr.mxu1 %v1244_v25  ;;  %v2034_v25 = vand.u32 4294901760, %v1589_v0  ;;  %v2050_v0 = vld [vmem:[#allocation16_spill] sm:$0xff] }
  0x64   :  { %1092 = vmatpush3.msra.mxu0 %v2029_v11  ;;  %1121 = vmatpush3.msra.mxu1 %v1267_v31  ;;  %v2035_v31 = vand.u32 4294901760, %v1600_v59  ;;  %v2051_v59 = vld [vmem:[#allocation18_spill] sm:$0xff] }
  0x65   :  { %1093 = vmatprep.subr.mxu0 %v2030_v16  ;;  %1122 = vmatprep.subr.mxu1 %v1273_v33  ;;  %v2036_v33 = vand.u32 4294901760, %v1615_v47 }
  0x66   :  { %1094 = vmatpush3.msra.mxu0 %v2031_v17  ;;  %1123 = vmatpush3.msra.mxu1 %v1282_v37  ;;  %v2038_v37 = vand.u32 4294901760, %v1633_v56 }
  0x67   :  { %1095 = vmatprep.subr.mxu0 %v2032_v18  ;;  %1124 = vmatprep.subr.mxu1 %v1992_v54 }
  0x68   :  { %1096 = vmatpush3.msra.mxu0 %v2033_v23  ;;  %1125 = vmatpush3.msra.mxu1 %v1994_v8 }
  0x69   :  { %1097 = vmatprep.subr.mxu0 %v2034_v25  ;;  %1126 = vmatprep.subr.mxu1 %v1996_v62 }
  0x6a   :  { %1098 = vmatpush3.msra.mxu0 %v2035_v31  ;;  %1127 = vmatpush3.msra.mxu1 %v1998_v63 }
  0x6b   :  { %1099 = vmatprep.subr.mxu0 %v2036_v33  ;;  %1128 = vmatprep.subr.mxu1 %v1999_v13 }
  0x6c   :  { %1100 = vmatpush3.msra.mxu0 %v2037_v34  ;;  %1129 = vmatpush3.msra.mxu1 %v2000_v28 }
  0x6d   :  { %1101 = vmatprep.subr.mxu0 %v2038_v37  ;;  %1130 = vmatprep.subr.mxu1 %v2001_v39 }
  0x6e   :  { %1102 = vmatpush3.msra.mxu0 %v2039_v50  ;;  %1131 = vmatpush3.msra.mxu1 %v2002_v55 }
  0x6f   :  { %1103 = vmatprep.subr.mxu0 %v2040_v60  ;;  %1132 = vmatprep.subr.mxu1 %v2003_v40 }
  0x70   :  { %1104 = vmatpush3.msra.mxu0 %v2041_v1  ;;  %812 = vmatprep.mubr.f32.mxu0 %v2043_v43 }
  0x71   :  { %1105 = vmatprep.subr.mxu0 %v2042_v12  ;;  %1133 = vmatpush3.msra.mxu1 %v2046_v22 }
  0x72   :  { %1106 = vmatpush3.msra.mxu0 %v2045_v53  ;;  %1134 = vmatprep.subr.mxu1 %v2048_v29 }
  0x73   :  { %814 = vmatmul.mubr.f32.vlgmr.msra.gmra.mxu0 %v2047_v48  ;;  %1135 = vmatpush3.msra.mxu1 %v2049_v2 }
  0x74   :  { %916 = vmatprep.mubr.f32.mxu1 %v2043_v43  ;;  %1136 = vmatprep.subr.mxu1 %v2050_v0 }
  0x75   :  { %1137 = vmatpush3.msra.mxu1 %v2051_v59 }
  0x76   :  { %1138 = vmatprep.subr.mxu1 %v2008_v6 }
  0x77   :  { %1139 = vmatpush3.msra.mxu1 %v2010_v7 }
  0x78   :  { %1140 = vmatprep.subr.mxu1 %v2012_v35 }
  0x79   :  { %1141 = vmatpush3.msra.mxu1 %v2014_v19 }
  0x7a   :  { %918 = vmatmul.mubr.f32.vlgmr.msra.gmra.mxu1 %v2047_v48 }
  0xf3   :  { %v967_v47 = vpop.f32.mrf.mxu0 }
  0xf4   :  { %v1002_v45 = vpop.f32.mrf.mxu1 }
  0xf5   :  { %v968_v14 = vpop.f32.mrf.mxu0 }
  0xf6   :  { %v1003_v42 = vpop.f32.mrf.mxu1  ;;  %v969_v51 = vadd.f32 %v968_v14, %v967_v47 }
  0xf7   :  { %v1004_v6 = vadd.f32 %v1003_v42, %v1002_v45 }
  0xf8   :  { %v170_v7 = vadd.f32 %v969_v51, %v49_v38 }
  0xfa   :  { %v402_v57 = vadd.f32 %v1004_v6, %v170_v7 }
 0x113   :  { %v1037_v56 = vpop.f32.mrf.mxu0 }
 0x115   :  { %v1038_v58 = vpop.f32.mrf.mxu0 }
 0x116   :  { %v1039_v61 = vadd.f32 %v1038_v58, %v1037_v56 }
 0x118   :  { %v1072_v52 = vpop.f32.mrf.mxu1  ;;  %v540_v49 = vadd.f32 %v1039_v61, %v402_v57 }
 0x11a   :  { %v1073_v35 = vpop.f32.mrf.mxu1 }
 0x11b   :  { %v1074_v8 = vadd.f32 %v1073_v35, %v1072_v52 }
 0x11d   :  { %v648_v63 = vadd.f32 %v1074_v8, %v540_v49 }
 0x133   :  { %v1107_v21 = vpop.f32.mrf.mxu0 }
 0x135   :  { %v1108_v54 = vpop.f32.mrf.mxu0 }
 0x136   :  { %v1109_v62 = vadd.f32 %v1108_v54, %v1107_v21 }
 0x138   :  { %v816_v28 = vadd.f32 %v1109_v62, %v648_v63 }
 0x13a   :  { %v1142_v20 = vpop.f32.mrf.mxu1 }
 0x13c   :  { %v1143_v13 = vpop.f32.mrf.mxu1 }
 0x13d   :  { %v1144_v39 = vadd.f32 %v1143_v13, %v1142_v20 }
 0x13f   :  { %v920_v55 = vadd.f32 %v1144_v39, %v816_v28 }
 0x141   :  { %v934_v40 = vmul.f32 -1.442695, %v920_v55 }
 0x143   :  { %1145 = vpow2.f32 %v934_v40 }
 0x150   :  { %v1146_v19 = vpop.eup %1145 }
 0x151   :  { %v926_v24 = vadd.f32 1.0, %v1146_v19 }
 0x153   :  { %1147 = vrcp.f32 %v926_v24 }
 0x160   :  { %v1148_v27 = vpop.eup %1147 }
 0x161   :  { %929 = vst [vmem:[%s1884_s3] sm:$0x1] %v1148_v27 }

</bundles_post_ra>
